<compile_context>
chip_gen: v5e
topology: v5e:2x2
jax: 0.10.0
libtpu: 0.0.40
codegen_flags: <defaults>
</compile_context>

<pallas_src>
import functools

import jax
import jax.numpy as jnp
from jax import lax
from jax.experimental import pallas as pl
from jax.experimental.pallas import tpu as pltpu


def _round_up(v, m):
    return (v + m - 1) // m * m


def _gnn_kernel(x_hbm, row_oh_ref, col_oh_ref,
                w1a_ref, w1b_ref, b1_ref, w2_ref, b2_ref,
                w3a_ref, w3b_ref, b3_ref, w4_ref, b4_ref,
                o_ref,
                agg_scr, hwa_scr, hwb_scr, copy_sem):
    l = pl.program_id(0)                 # layer index (sequential)
    e = pl.program_id(1)                 # edge-tile index (reduction, innermost)
    last_l = pl.num_programs(0) - 1
    last_e = pl.num_programs(1) - 1
    del last_l  # final state is already in o_ref; Pallas writes it back at grid end.

    # Load the initial node features exactly once, straight into the resident
    # output block (o_ref doubles as the running node-state carrier h).
    @pl.when(jnp.logical_and(l == 0, e == 0))
    def _():
        cp = pltpu.make_async_copy(x_hbm, o_ref, copy_sem)
        cp.start()
        cp.wait()

    # Per-layer setup on the first edge tile: zero the scatter accumulator and
    # pre-project node features through W1 (2*N*H*H MACs instead of 2*E*H*H).
    # The pre-projections feed bf16 MXU gathers, so they are stored bf16.
    @pl.when(e == 0)
    def _():
        h = o_ref[...]
        agg_scr[...] = jnp.zeros_like(agg_scr)
        hwa_scr[...] = jnp.dot(h, w1a_ref[0],
                               preferred_element_type=jnp.float32).astype(hwa_scr.dtype)
        hwb_scr[...] = jnp.dot(h, w1b_ref[0],
                               preferred_element_type=jnp.float32).astype(hwb_scr.dtype)

    # ---- per edge tile: gather via bf16 one-hot matmuls on the bf16
    # pre-projections (bf16 x bf16 -> f32 accumulate on the MXU), message MLP in
    # f32, scatter-add via a transposed-LHS bf16 matmul. ----
    row_oh = row_oh_ref[...]                         # [TE, Np] bf16 (0/1 exact)
    col_oh = col_oh_ref[...]                         # [TE, Np] bf16

    m_pre = (jnp.dot(row_oh, hwa_scr[...], preferred_element_type=jnp.float32)
             + jnp.dot(col_oh, hwb_scr[...], preferred_element_type=jnp.float32)
             + b1_ref[0])                                                   # [TE, Hp]
    msg = (jnp.dot(jnp.maximum(m_pre, 0.0), w2_ref[0],
                   preferred_element_type=jnp.float32)
           + b2_ref[0])                                                     # [TE, Hp]

    # scatter-add over `col`:  agg += col_oh^T @ msg  (contract the edge dim).
    agg_scr[...] += lax.dot_general(
        col_oh, msg.astype(jnp.bfloat16),
        dimension_numbers=(((0,), (0,)), ((), ())),
        preferred_element_type=jnp.float32)                                 # [Np, Hp]

    # ---- per-layer finalize on the last edge tile: update MLP + residual,
    # written back into the resident output block (the running h). ----
    @pl.when(e == last_e)
    def _():
        h = o_ref[...]
        u_pre = (jnp.dot(h, w3a_ref[0], preferred_element_type=jnp.float32)
                 + jnp.dot(agg_scr[...], w3b_ref[0],
                           preferred_element_type=jnp.float32)
                 + b3_ref[0])
        upd = (jnp.dot(jnp.maximum(u_pre, 0.0), w4_ref[0],
                       preferred_element_type=jnp.float32)
               + b4_ref[0])
        o_ref[...] = (upd + h).astype(o_ref.dtype)    # residual: h = layer(h) + h


def _resident_vmem_bytes(Np, Hp, TE):
    """Rough resident-VMEM estimate used to auto-size the edge tile."""
    node = 2 * Np * Hp * 4 + 2 * Np * Hp * 2          # out block + agg (f32), hwa + hwb (bf16)
    onehot = 2 * 2 * TE * Np * 2                      # row/col tiles, double-buffered, bf16
    weights = 6 * 2 * Hp * Hp * 4 + 4 * 2 * Hp * 4    # double-buffered weight / bias blocks
    temps = 6 * TE * Hp * 4                           # m_pre / msg / relu temporaries
    return node + onehot + weights + temps


@functools.partial(jax.jit, static_argnames=("edge_tile",))
def simple_fallback_gnn(x, pos, edge_index, params, batch=None, *, edge_tile=512):
    """x: [N, H], pos: [N, 3] (unused, as in the torch module), edge_index: [2, E] int."""
    del pos, batch  # unused by SimpleFallbackGNN.forward
    N, H = x.shape
    E = edge_index.shape[1]
    L = params["w1"].shape[0]
    if E == 0:
        # Each GraphConvLayer returns x unchanged when E == 0, so the residual
        # doubles h every layer: h = x * 2**L.
        return (x * (2.0 ** L)).astype(x.dtype)

    # Lane-dense hidden dim (multiple of 128; multiple of 256 when H > 128 so the
    # v6e/v7x 256-wide MXU stays full); nodes padded to bf16 sublane multiples.
    Hp = _round_up(H, 128) if H <= 128 else _round_up(H, 256)
    Np = _round_up(N, 16)

    # Edge tile: multiple of 16 (bf16 sublane packing), auto-shrunk to the VMEM
    # budget of the current chip generation (v7x has only 64 MiB per TC).
    try:
        info = pltpu.get_tpu_info()
        vmem_cap = int(getattr(info, "vmem_capacity_bytes", 64 * 1024 * 1024))
    except Exception:  # pragma: no cover - conservative fallback
        vmem_cap = 64 * 1024 * 1024
    budget = int(vmem_cap * 0.6)

    Ep0 = _round_up(E, 16)
    TE = min(_round_up(min(edge_tile, Ep0), 16), Ep0)
    while TE > 128 and _resident_vmem_bytes(Np, Hp, TE) > budget:
        TE //= 2
    TE = max(TE, 16)
    Ep = _round_up(Ep0, TE)
    NE = Ep // TE
    vmem_limit = int(min(vmem_cap * 0.9,
                         max(2 * _resident_vmem_bytes(Np, Hp, TE), 32 * 1024 * 1024)))

    f32 = jnp.float32
    x_p = jnp.zeros((Np, Hp), f32).at[:N, :H].set(x.astype(f32))

    row = edge_index[0]
    col = edge_index[1]
    # One-hot gather/scatter matrices in bf16 (0/1 are exact); padded edge rows
    # are all-zero so they contribute nothing to the scatter.
    row_oh = jnp.zeros((Ep, Np), jnp.bfloat16).at[:E].set(
        jax.nn.one_hot(row, Np, dtype=jnp.bfloat16))
    col_oh = jnp.zeros((Ep, Np), jnp.bfloat16).at[:E].set(
        jax.nn.one_hot(col, Np, dtype=jnp.bfloat16))

    def pad_w(w, rp, cp):          # [L, r, c] -> [L, rp, cp] zero-padded
        L_, r, c = w.shape
        return jnp.zeros((L_, rp, cp), f32).at[:, :r, :c].set(w.astype(f32))

    def pad_b(b, cp):              # [L, 1, c] -> [L, 1, cp] zero-padded
        L_, _, c = b.shape
        return jnp.zeros((L_, 1, cp), f32).at[:, :, :c].set(b.astype(f32))

    w1 = params["w1"]                              # [L, 3H, H]
    w1a = pad_w(w1[:, :H, :], Hp, Hp)              # x[row] block
    w1b = pad_w(w1[:, H:2 * H, :], Hp, Hp)         # x[col] block
    # rows 2H:3H of W1 multiply edge_attr == 0 and are never shipped/used.
    w2p = pad_w(params["w2"], Hp, Hp)
    w3 = params["w3"]                              # [L, 2H, H]
    w3a = pad_w(w3[:, :H, :], Hp, Hp)
    w3b = pad_w(w3[:, H:, :], Hp, Hp)
    w4p = pad_w(params["w4"], Hp, Hp)
    b1p = pad_b(params["b1"], Hp)
    b2p = pad_b(params["b2"], Hp)
    b3p = pad_b(params["b3"], Hp)
    b4p = pad_b(params["b4"], Hp)

    wspec = pl.BlockSpec((1, Hp, Hp), lambda l, e: (l, 0, 0))
    bspec = pl.BlockSpec((1, 1, Hp), lambda l, e: (l, 0, 0))

    grid_spec = pltpu.PrefetchScalarGridSpec(
        num_scalar_prefetch=0,
        grid=(L, NE),
        in_specs=[
            pl.BlockSpec(memory_space=pl.ANY),             # x stays in HBM; DMA once
            pl.BlockSpec((TE, Np), lambda l, e: (e, 0)),   # row one-hot edge tile
            pl.BlockSpec((TE, Np), lambda l, e: (e, 0)),   # col one-hot edge tile
            wspec, wspec, bspec,                           # W1a, W1b, b1
            wspec, bspec,                                  # W2, b2
            wspec, wspec, bspec,                           # W3a, W3b, b3
            wspec, bspec,                                  # W4, b4
        ],
        out_specs=pl.BlockSpec((Np, Hp), lambda l, e: (0, 0)),  # resident h carrier
        scratch_shapes=[
            pltpu.VMEM((Np, Hp), jnp.float32),    # scatter accumulator
            pltpu.VMEM((Np, Hp), jnp.bfloat16),   # h @ W1[:H]   (bf16 MXU operand)
            pltpu.VMEM((Np, Hp), jnp.bfloat16),   # h @ W1[H:2H] (bf16 MXU operand)
            pltpu.SemaphoreType.DMA(()),          # one-shot x -> o_ref copy
        ],
    )

    out = pl.pallas_call(
        _gnn_kernel,
        out_shape=jax.ShapeDtypeStruct((Np, Hp), f32),
        grid_spec=grid_spec,
        compiler_params=pltpu.CompilerParams(
            dimension_semantics=("arbitrary", "arbitrary"),  # layers + edge reduction
            vmem_limit_bytes=vmem_limit),
    )(x_p, row_oh, col_oh,
      w1a, w1b, b1p, w2p, b2p, w3a, w3b, b3p, w4p, b4p)

    return out[:N, :H].astype(x.dtype)


def init_params(key, hidden_dim, num_layers):
    """Deterministic init mirroring nn.Linear's U(-1/sqrt(fan_in), 1/sqrt(fan_in)).
    Weights stored transposed: [fan_in, fan_out]."""
    H = hidden_dim

    def linear(k, fan_in, fan_out):
        kw, kb = jax.random.split(k)
        bound = 1.0 / float(fan_in) ** 0.5
        w = jax.random.uniform(kw, (fan_in, fan_out), jnp.float32, -bound, bound)
        b = jax.random.uniform(kb, (1, fan_out), jnp.float32, -bound, bound)
        return w, b

    keys = jax.random.split(key, num_layers * 4).reshape(num_layers, 4, 2)
    w1, b1, w2, b2, w3, b3, w4, b4 = ([] for _ in range(8))
    for l in range(num_layers):
        w, b = linear(keys[l, 0], 3 * H, H); w1.append(w); b1.append(b)
        w, b = linear(keys[l, 1], H, H);     w2.append(w); b2.append(b)
        w, b = linear(keys[l, 2], 2 * H, H); w3.append(w); b3.append(b)
        w, b = linear(keys[l, 3], H, H);     w4.append(w); b4.append(b)
    stack = lambda xs: jnp.stack(xs, axis=0)
    return {"w1": stack(w1), "b1": stack(b1), "w2": stack(w2), "b2": stack(b2),
            "w3": stack(w3), "b3": stack(b3), "w4": stack(w4), "b4": stack(b4)}


def ref_forward(x, edge_index, params, *, gather_dtype=None):
    """Pure-JAX reference. gather_dtype=None reproduces the PyTorch f32 math
    (matmuls at HIGHEST precision); gather_dtype=jnp.bfloat16 additionally mirrors
    the kernel's bf16 MXU operands on the gather/scatter path."""
    hp = lax.Precision.HIGHEST
    h = x
    L = params["w1"].shape[0]
    H = x.shape[1]
    row, col = edge_index[0], edge_index[1]
    for l in range(L):
        w1 = params["w1"][l]
        hwa = jnp.dot(h, w1[:H], precision=hp)
        hwb = jnp.dot(h, w1[H:2 * H], precision=hp)   # rows 2H:3H hit edge_attr == 0
        if gather_dtype is not None:
            hwa = hwa.astype(gather_dtype).astype(jnp.float32)
            hwb = hwb.astype(gather_dtype).astype(jnp.float32)
        m = jnp.maximum(hwa[row] + hwb[col] + params["b1"][l], 0.0)
        m = jnp.dot(m, params["w2"][l], precision=hp) + params["b2"][l]
        if gather_dtype is not None:
            m = m.astype(gather_dtype).astype(jnp.float32)
        agg = jnp.zeros_like(h).at[col].add(m)
        u = jnp.concatenate([h, agg], axis=-1)
        u = jnp.maximum(jnp.dot(u, params["w3"][l], precision=hp) + params["b3"][l], 0.0)
        u = jnp.dot(u, params["w4"][l], precision=hp) + params["b4"][l]
        h = u + h
    return h


if __name__ == "__main__":
    key = jax.random.PRNGKey(0)
    N, H, E, L = 8, 32, 40, 2  # nodes, hidden_dim, edges, num_layers
    k_x, k_pos, k_e, k_p = jax.random.split(key, 4)

    x = jax.random.normal(k_x, (N, H), jnp.float32)
    pos = jax.random.normal(k_pos, (N, 3), jnp.float32)  # unused by forward
    edge_index = jax.random.randint(k_e, (2, E), 0, N, jnp.int32)
    params = init_params(k_p, H, L)

    ref_f32 = ref_forward(x, edge_index, params)                               # pure f32 math
    ref_match = ref_forward(x, edge_index, params, gather_dtype=jnp.bfloat16)  # kernel-matched

    # Exercise both the single-edge-tile path and the multi-tile accumulation path.
    for tile in (512, 16):
        out = simple_fallback_gnn(x, pos, edge_index, params, edge_tile=tile)
        out = jax.block_until_ready(out)
        assert out.shape == (N, H) and out.dtype == jnp.float32
        if not jnp.allclose(out, ref_match, rtol=1e-2, atol=1e-2):
            raise AssertionError(f"kernel vs matched-precision reference (tile={tile})")
        if not jnp.allclose(out, ref_f32, rtol=5e-2, atol=5e-2):
            raise AssertionError(f"kernel vs pure-f32 reference (tile={tile})")

    # E == 0 path: every layer is identity, residual doubles h -> x * 2**L.
    out0 = jax.block_until_ready(
        simple_fallback_gnn(x, pos, jnp.zeros((2, 0), jnp.int32), params))
    if not jnp.allclose(out0, x * (2.0 ** L), rtol=1e-6, atol=1e-6):
        raise AssertionError("E == 0 fast path does not match module semantics")

    print("KERNEL_OK")
</pallas_src>

<mosaic_0001>
module attributes {stable_mosaic.version = 11 : i64} {
  func.func @_gnn_kernel(%arg0: i32, %arg1: i32, %arg2: memref<16x128xf32, #tpu.memory_space<any>>, %arg3: memref<48x16xbf16, #tpu.memory_space<vmem>>, %arg4: memref<48x16xbf16, #tpu.memory_space<vmem>>, %arg5: memref<1x128x128xf32, #tpu.memory_space<vmem>>, %arg6: memref<1x128x128xf32, #tpu.memory_space<vmem>>, %arg7: memref<1x1x128xf32, #tpu.memory_space<vmem>>, %arg8: memref<1x128x128xf32, #tpu.memory_space<vmem>>, %arg9: memref<1x1x128xf32, #tpu.memory_space<vmem>>, %arg10: memref<1x128x128xf32, #tpu.memory_space<vmem>>, %arg11: memref<1x128x128xf32, #tpu.memory_space<vmem>>, %arg12: memref<1x1x128xf32, #tpu.memory_space<vmem>>, %arg13: memref<1x128x128xf32, #tpu.memory_space<vmem>>, %arg14: memref<1x1x128xf32, #tpu.memory_space<vmem>>, %arg15: memref<16x128xf32, #tpu.memory_space<vmem>>, %arg16: memref<16x128xf32, #tpu.memory_space<vmem>>, %arg17: memref<16x128xbf16, #tpu.memory_space<vmem>>, %arg18: memref<16x128xbf16, #tpu.memory_space<vmem>>, %arg19: memref<!tpu.dma_semaphore, #tpu.memory_space<semaphore_mem>>) attributes {dimension_semantics = [#tpu.dimension_semantics<arbitrary>, #tpu.dimension_semantics<arbitrary>], iteration_bounds = array<i64: 2, 1>, scalar_prefetch = 0 : i64, scratch_operands = 4 : i64, tpu.core_type = #tpu.core_type<tc>, window_params = [{}, {transform_indices = @transform_1, window_bounds = array<i64: 48, 16>}, {transform_indices = @transform_2, window_bounds = array<i64: 48, 16>}, {transform_indices = @transform_3, window_bounds = array<i64: 1, 128, 128>}, {transform_indices = @transform_4, window_bounds = array<i64: 1, 128, 128>}, {transform_indices = @transform_5, window_bounds = array<i64: 1, 1, 128>}, {transform_indices = @transform_6, window_bounds = array<i64: 1, 128, 128>}, {transform_indices = @transform_7, window_bounds = array<i64: 1, 1, 128>}, {transform_indices = @transform_8, window_bounds = array<i64: 1, 128, 128>}, {transform_indices = @transform_9, window_bounds = array<i64: 1, 128, 128>}, {transform_indices = @transform_10, window_bounds = array<i64: 1, 1, 128>}, {transform_indices = @transform_11, window_bounds = array<i64: 1, 128, 128>}, {transform_indices = @transform_12, window_bounds = array<i64: 1, 1, 128>}, {pipeline_mode = #tpu.pipeline_mode<synchronous>, transform_indices = @transform_13, window_bounds = array<i64: 16, 128>}]} {
    %c0_i32 = arith.constant 0 : i32
    %0 = arith.cmpi eq, %arg0, %c0_i32 : i32
    %c0_i32_0 = arith.constant 0 : i32
    %1 = arith.cmpi eq, %arg1, %c0_i32_0 : i32
    %2 = arith.andi %0, %1 : i1
    %3 = arith.extui %2 : i1 to i32
    %c0_i32_1 = arith.constant 0 : i32
    %4 = arith.cmpi ne, %3, %c0_i32_1 : i32
    scf.if %4 {
      tpu.enqueue_dma source(%arg2 : memref<16x128xf32, #tpu.memory_space<any>>) target(%arg15 : memref<16x128xf32, #tpu.memory_space<vmem>>) target_semaphore(%arg19 : memref<!tpu.dma_semaphore, #tpu.memory_space<semaphore_mem>>)
      tpu.wait_dma2 semaphore(%arg19 : memref<!tpu.dma_semaphore, #tpu.memory_space<semaphore_mem>>) src(%arg2 : memref<16x128xf32, #tpu.memory_space<any>>) dst(%arg15 : memref<16x128xf32, #tpu.memory_space<vmem>>)
    } else {
    }
    %c0_i32_2 = arith.constant 0 : i32
    %5 = arith.cmpi eq, %arg1, %c0_i32_2 : i32
    %6 = arith.extui %5 : i1 to i32
    %c0_i32_3 = arith.constant 0 : i32
    %7 = arith.cmpi ne, %6, %c0_i32_3 : i32
    scf.if %7 {
      %c0_30 = arith.constant 0 : index
      %c0_31 = arith.constant 0 : index
      %36 = vector.load %arg15[%c0_30, %c0_31] : memref<16x128xf32, #tpu.memory_space<vmem>>, vector<16x128xf32>
      %cst_32 = arith.constant 0.000000e+00 : f32
      %37 = vector.broadcast %cst_32 : f32 to vector<16x128xf32>
      %c0_33 = arith.constant 0 : index
      %c0_34 = arith.constant 0 : index
      %38 = vector.load %arg16[%c0_33, %c0_34] : memref<16x128xf32, #tpu.memory_space<vmem>>, vector<16x128xf32>
      tpu.vector_store %arg16[%c0_33, %c0_34], %37 {strides = array<i32>} : memref<16x128xf32, #tpu.memory_space<vmem>>, vector<16x128xf32>,
      %c0_35 = arith.constant 0 : index
      %c0_36 = arith.constant 0 : index
      %c0_37 = arith.constant 0 : index
      %39 = vector.load %arg5[%c0_35, %c0_36, %c0_37] : memref<1x128x128xf32, #tpu.memory_space<vmem>>, vector<1x128x128xf32>
      %40 = vector.shape_cast %39 : vector<1x128x128xf32> to vector<128x128xf32>
      %cst_38 = arith.constant dense<0.000000e+00> : vector<16x128xf32>
      %41 = tpu.matmul %36, %40, %cst_38 {dimension_numbers = #tpu.dot_dimension_numbers<[1], [0], [0], [1], [0, 0, 1, 1], [], []>} : vector<16x128xf32>, vector<128x128xf32>, vector<16x128xf32> -> vector<16x128xf32>
      %42 = arith.truncf %41 : vector<16x128xf32> to vector<16x128xbf16>
      %c0_39 = arith.constant 0 : index
      %c0_40 = arith.constant 0 : index
      %43 = vector.load %arg17[%c0_39, %c0_40] : memref<16x128xbf16, #tpu.memory_space<vmem>>, vector<16x128xbf16>
      tpu.vector_store %arg17[%c0_39, %c0_40], %42 {strides = array<i32>} : memref<16x128xbf16, #tpu.memory_space<vmem>>, vector<16x128xbf16>,
      %c0_41 = arith.constant 0 : index
      %c0_42 = arith.constant 0 : index
      %c0_43 = arith.constant 0 : index
      %44 = vector.load %arg6[%c0_41, %c0_42, %c0_43] : memref<1x128x128xf32, #tpu.memory_space<vmem>>, vector<1x128x128xf32>
      %45 = vector.shape_cast %44 : vector<1x128x128xf32> to vector<128x128xf32>
      %cst_44 = arith.constant dense<0.000000e+00> : vector<16x128xf32>
      %46 = tpu.matmul %36, %45, %cst_44 {dimension_numbers = #tpu.dot_dimension_numbers<[1], [0], [0], [1], [0, 0, 1, 1], [], []>} : vector<16x128xf32>, vector<128x128xf32>, vector<16x128xf32> -> vector<16x128xf32>
      %47 = arith.truncf %46 : vector<16x128xf32> to vector<16x128xbf16>
      %c0_45 = arith.constant 0 : index
      %c0_46 = arith.constant 0 : index
      %48 = vector.load %arg18[%c0_45, %c0_46] : memref<16x128xbf16, #tpu.memory_space<vmem>>, vector<16x128xbf16>
      tpu.vector_store %arg18[%c0_45, %c0_46], %47 {strides = array<i32>} : memref<16x128xbf16, #tpu.memory_space<vmem>>, vector<16x128xbf16>,
    } else {
    }
    %c0 = arith.constant 0 : index
    %c0_4 = arith.constant 0 : index
    %8 = vector.load %arg3[%c0, %c0_4] : memref<48x16xbf16, #tpu.memory_space<vmem>>, vector<48x16xbf16>
    %c0_5 = arith.constant 0 : index
    %c0_6 = arith.constant 0 : index
    %9 = vector.load %arg4[%c0_5, %c0_6] : memref<48x16xbf16, #tpu.memory_space<vmem>>, vector<48x16xbf16>
    %c0_7 = arith.constant 0 : index
    %c0_8 = arith.constant 0 : index
    %10 = vector.load %arg17[%c0_7, %c0_8] : memref<16x128xbf16, #tpu.memory_space<vmem>>, vector<16x128xbf16>
    %cst = arith.constant dense<0.000000e+00> : vector<48x128xf32>
    %11 = tpu.matmul %8, %10, %cst {dimension_numbers = #tpu.dot_dimension_numbers<[1], [0], [0], [1], [0, 0, 1, 1], [], []>} : vector<48x16xbf16>, vector<16x128xbf16>, vector<48x128xf32> -> vector<48x128xf32>
    %c0_9 = arith.constant 0 : index
    %c0_10 = arith.constant 0 : index
    %12 = vector.load %arg18[%c0_9, %c0_10] : memref<16x128xbf16, #tpu.memory_space<vmem>>, vector<16x128xbf16>
    %cst_11 = arith.constant dense<0.000000e+00> : vector<48x128xf32>
    %13 = tpu.matmul %9, %12, %cst_11 {dimension_numbers = #tpu.dot_dimension_numbers<[1], [0], [0], [1], [0, 0, 1, 1], [], []>} : vector<48x16xbf16>, vector<16x128xbf16>, vector<48x128xf32> -> vector<48x128xf32>
    %14 = arith.addf %11, %13 : vector<48x128xf32>
    %c0_12 = arith.constant 0 : index
    %c0_13 = arith.constant 0 : index
    %c0_14 = arith.constant 0 : index
    %15 = vector.load %arg7[%c0_12, %c0_13, %c0_14] : memref<1x1x128xf32, #tpu.memory_space<vmem>>, vector<1x1x128xf32>
    %16 = vector.shape_cast %15 : vector<1x1x128xf32> to vector<1x128xf32>
    %17 = vector.broadcast %16 : vector<1x128xf32> to vector<48x128xf32>
    %18 = arith.addf %14, %17 : vector<48x128xf32>
    %cst_15 = arith.constant 0.000000e+00 : f32
    %19 = vector.broadcast %cst_15 : f32 to vector<48x128xf32>
    %20 = arith.maximumf %18, %19 : vector<48x128xf32>
    %c0_16 = arith.constant 0 : index
    %c0_17 = arith.constant 0 : index
    %c0_18 = arith.constant 0 : index
    %21 = vector.load %arg8[%c0_16, %c0_17, %c0_18] : memref<1x128x128xf32, #tpu.memory_space<vmem>>, vector<1x128x128xf32>
    %22 = vector.shape_cast %21 : vector<1x128x128xf32> to vector<128x128xf32>
    %cst_19 = arith.constant dense<0.000000e+00> : vector<48x128xf32>
    %23 = tpu.matmul %20, %22, %cst_19 {dimension_numbers = #tpu.dot_dimension_numbers<[1], [0], [0], [1], [0, 0, 1, 1], [], []>} : vector<48x128xf32>, vector<128x128xf32>, vector<48x128xf32> -> vector<48x128xf32>
    %c0_20 = arith.constant 0 : index
    %c0_21 = arith.constant 0 : index
    %c0_22 = arith.constant 0 : index
    %24 = vector.load %arg9[%c0_20, %c0_21, %c0_22] : memref<1x1x128xf32, #tpu.memory_space<vmem>>, vector<1x1x128xf32>
    %25 = vector.shape_cast %24 : vector<1x1x128xf32> to vector<1x128xf32>
    %26 = vector.broadcast %25 : vector<1x128xf32> to vector<48x128xf32>
    %27 = arith.addf %23, %26 : vector<48x128xf32>
    %c0_23 = arith.constant 0 : index
    %c0_24 = arith.constant 0 : index
    %28 = vector.load %arg16[%c0_23, %c0_24] : memref<16x128xf32, #tpu.memory_space<vmem>>, vector<16x128xf32>
    %29 = arith.truncf %27 : vector<48x128xf32> to vector<48x128xbf16>
    %cst_25 = arith.constant dense<0.000000e+00> : vector<16x128xf32>
    %30 = tpu.matmul %9, %29, %cst_25 {dimension_numbers = #tpu.dot_dimension_numbers<[0], [0], [1], [1], [0, 1, 1, 1], [], []>} : vector<48x16xbf16>, vector<48x128xbf16>, vector<16x128xf32> -> vector<16x128xf32>
    %31 = arith.addf %28, %30 : vector<16x128xf32>
    %c0_26 = arith.constant 0 : index
    %c0_27 = arith.constant 0 : index
    %32 = vector.load %arg16[%c0_26, %c0_27] : memref<16x128xf32, #tpu.memory_space<vmem>>, vector<16x128xf32>
    tpu.vector_store %arg16[%c0_26, %c0_27], %31 {strides = array<i32>} : memref<16x128xf32, #tpu.memory_space<vmem>>, vector<16x128xf32>,
    %c0_i32_28 = arith.constant 0 : i32
    %33 = arith.cmpi eq, %arg1, %c0_i32_28 : i32
    %34 = arith.extui %33 : i1 to i32
    %c0_i32_29 = arith.constant 0 : i32
    %35 = arith.cmpi ne, %34, %c0_i32_29 : i32
    scf.if %35 {
      %c0_30 = arith.constant 0 : index
      %c0_31 = arith.constant 0 : index
      %36 = vector.load %arg15[%c0_30, %c0_31] : memref<16x128xf32, #tpu.memory_space<vmem>>, vector<16x128xf32>
      %c0_32 = arith.constant 0 : index
      %c0_33 = arith.constant 0 : index
      %c0_34 = arith.constant 0 : index
      %37 = vector.load %arg10[%c0_32, %c0_33, %c0_34] : memref<1x128x128xf32, #tpu.memory_space<vmem>>, vector<1x128x128xf32>
      %38 = vector.shape_cast %37 : vector<1x128x128xf32> to vector<128x128xf32>
      %cst_35 = arith.constant dense<0.000000e+00> : vector<16x128xf32>
      %39 = tpu.matmul %36, %38, %cst_35 {dimension_numbers = #tpu.dot_dimension_numbers<[1], [0], [0], [1], [0, 0, 1, 1], [], []>} : vector<16x128xf32>, vector<128x128xf32>, vector<16x128xf32> -> vector<16x128xf32>
      %c0_36 = arith.constant 0 : index
      %c0_37 = arith.constant 0 : index
      %40 = vector.load %arg16[%c0_36, %c0_37] : memref<16x128xf32, #tpu.memory_space<vmem>>, vector<16x128xf32>
      %c0_38 = arith.constant 0 : index
      %c0_39 = arith.constant 0 : index
      %c0_40 = arith.constant 0 : index
      %41 = vector.load %arg11[%c0_38, %c0_39, %c0_40] : memref<1x128x128xf32, #tpu.memory_space<vmem>>, vector<1x128x128xf32>
      %42 = vector.shape_cast %41 : vector<1x128x128xf32> to vector<128x128xf32>
      %cst_41 = arith.constant dense<0.000000e+00> : vector<16x128xf32>
      %43 = tpu.matmul %40, %42, %cst_41 {dimension_numbers = #tpu.dot_dimension_numbers<[1], [0], [0], [1], [0, 0, 1, 1], [], []>} : vector<16x128xf32>, vector<128x128xf32>, vector<16x128xf32> -> vector<16x128xf32>
      %44 = arith.addf %39, %43 : vector<16x128xf32>
      %c0_42 = arith.constant 0 : index
      %c0_43 = arith.constant 0 : index
      %c0_44 = arith.constant 0 : index
      %45 = vector.load %arg12[%c0_42, %c0_43, %c0_44] : memref<1x1x128xf32, #tpu.memory_space<vmem>>, vector<1x1x128xf32>
      %46 = vector.shape_cast %45 : vector<1x1x128xf32> to vector<1x128xf32>
      %47 = vector.broadcast %46 : vector<1x128xf32> to vector<16x128xf32>
      %48 = arith.addf %44, %47 : vector<16x128xf32>
      %cst_45 = arith.constant 0.000000e+00 : f32
      %49 = vector.broadcast %cst_45 : f32 to vector<16x128xf32>
      %50 = arith.maximumf %48, %49 : vector<16x128xf32>
      %c0_46 = arith.constant 0 : index
      %c0_47 = arith.constant 0 : index
      %c0_48 = arith.constant 0 : index
      %51 = vector.load %arg13[%c0_46, %c0_47, %c0_48] : memref<1x128x128xf32, #tpu.memory_space<vmem>>, vector<1x128x128xf32>
      %52 = vector.shape_cast %51 : vector<1x128x128xf32> to vector<128x128xf32>
      %cst_49 = arith.constant dense<0.000000e+00> : vector<16x128xf32>
      %53 = tpu.matmul %50, %52, %cst_49 {dimension_numbers = #tpu.dot_dimension_numbers<[1], [0], [0], [1], [0, 0, 1, 1], [], []>} : vector<16x128xf32>, vector<128x128xf32>, vector<16x128xf32> -> vector<16x128xf32>
      %c0_50 = arith.constant 0 : index
      %c0_51 = arith.constant 0 : index
      %c0_52 = arith.constant 0 : index
      %54 = vector.load %arg14[%c0_50, %c0_51, %c0_52] : memref<1x1x128xf32, #tpu.memory_space<vmem>>, vector<1x1x128xf32>
      %55 = vector.shape_cast %54 : vector<1x1x128xf32> to vector<1x128xf32>
      %56 = vector.broadcast %55 : vector<1x128xf32> to vector<16x128xf32>
      %57 = arith.addf %53, %56 : vector<16x128xf32>
      %58 = arith.addf %57, %36 : vector<16x128xf32>
      %c0_53 = arith.constant 0 : index
      %c0_54 = arith.constant 0 : index
      %59 = vector.load %arg15[%c0_53, %c0_54] : memref<16x128xf32, #tpu.memory_space<vmem>>, vector<16x128xf32>
      tpu.vector_store %arg15[%c0_53, %c0_54], %58 {strides = array<i32>} : memref<16x128xf32, #tpu.memory_space<vmem>>, vector<16x128xf32>,
    } else {
    }
    return
  }
  func.func @transform_1(%arg0: i32, %arg1: i32) -> (i32, i32) {
    %c0_i32 = arith.constant 0 : i32
    %c0_i32_0 = arith.constant 0 : i32
    return %arg1, %c0_i32 : i32, i32
  }
  func.func @transform_2(%arg0: i32, %arg1: i32) -> (i32, i32) {
    %c0_i32 = arith.constant 0 : i32
    %c0_i32_0 = arith.constant 0 : i32
    return %arg1, %c0_i32 : i32, i32
  }
  func.func @transform_3(%arg0: i32, %arg1: i32) -> (i32, i32, i32) {
    %c0_i32 = arith.constant 0 : i32
    %c0_i32_0 = arith.constant 0 : i32
    %c0_i32_1 = arith.constant 0 : i32
    return %arg0, %c0_i32, %c0_i32_0 : i32, i32, i32
  }
  func.func @transform_4(%arg0: i32, %arg1: i32) -> (i32, i32, i32) {
    %c0_i32 = arith.constant 0 : i32
    %c0_i32_0 = arith.constant 0 : i32
    %c0_i32_1 = arith.constant 0 : i32
    return %arg0, %c0_i32, %c0_i32_0 : i32, i32, i32
  }
  func.func @transform_5(%arg0: i32, %arg1: i32) -> (i32, i32, i32) {
    %c0_i32 = arith.constant 0 : i32
    %c0_i32_0 = arith.constant 0 : i32
    %c0_i32_1 = arith.constant 0 : i32
    return %arg0, %c0_i32, %c0_i32_0 : i32, i32, i32
  }
  func.func @transform_6(%arg0: i32, %arg1: i32) -> (i32, i32, i32) {
    %c0_i32 = arith.constant 0 : i32
    %c0_i32_0 = arith.constant 0 : i32
    %c0_i32_1 = arith.constant 0 : i32
    return %arg0, %c0_i32, %c0_i32_0 : i32, i32, i32
  }
  func.func @transform_7(%arg0: i32, %arg1: i32) -> (i32, i32, i32) {
    %c0_i32 = arith.constant 0 : i32
    %c0_i32_0 = arith.constant 0 : i32
    %c0_i32_1 = arith.constant 0 : i32
    return %arg0, %c0_i32, %c0_i32_0 : i32, i32, i32
  }
  func.func @transform_8(%arg0: i32, %arg1: i32) -> (i32, i32, i32) {
    %c0_i32 = arith.constant 0 : i32
    %c0_i32_0 = arith.constant 0 : i32
    %c0_i32_1 = arith.constant 0 : i32
    return %arg0, %c0_i32, %c0_i32_0 : i32, i32, i32
  }
  func.func @transform_9(%arg0: i32, %arg1: i32) -> (i32, i32, i32) {
    %c0_i32 = arith.constant 0 : i32
    %c0_i32_0 = arith.constant 0 : i32
    %c0_i32_1 = arith.constant 0 : i32
    return %arg0, %c0_i32, %c0_i32_0 : i32, i32, i32
  }
  func.func @transform_10(%arg0: i32, %arg1: i32) -> (i32, i32, i32) {
    %c0_i32 = arith.constant 0 : i32
    %c0_i32_0 = arith.constant 0 : i32
    %c0_i32_1 = arith.constant 0 : i32
    return %arg0, %c0_i32, %c0_i32_0 : i32, i32, i32
  }
  func.func @transform_11(%arg0: i32, %arg1: i32) -> (i32, i32, i32) {
    %c0_i32 = arith.constant 0 : i32
    %c0_i32_0 = arith.constant 0 : i32
    %c0_i32_1 = arith.constant 0 : i32
    return %arg0, %c0_i32, %c0_i32_0 : i32, i32, i32
  }
  func.func @transform_12(%arg0: i32, %arg1: i32) -> (i32, i32, i32) {
    %c0_i32 = arith.constant 0 : i32
    %c0_i32_0 = arith.constant 0 : i32
    %c0_i32_1 = arith.constant 0 : i32
    return %arg0, %c0_i32, %c0_i32_0 : i32, i32, i32
  }
  func.func @transform_13(%arg0: i32, %arg1: i32) -> (i32, i32) {
    %c0_i32 = arith.constant 0 : i32
    %c0_i32_0 = arith.constant 0 : i32
    %c0_i32_1 = arith.constant 0 : i32
    return %c0_i32, %c0_i32_0 : i32, i32
  }
}

</mosaic_0001>

<bundles_post_ra>
// kernel: simple_fallback_gnn.1
= control target key start
LH: loop header
LB: loop body
LE: loop exit
PB: predicated region body
PF: predicated region fallthrough
CT: control target
= control target key end

     0   :  { %s1502_s25 = smov 0   ;;  %s1504_s26 = smov 0   ;;  %s1757_s0 = inlined_call_operand.vmem [shape: f32[16,128], index: 0, kind: input, shape index: {}]   ;;  %s1758_s1 = inlined_call_operand.vmem [shape: bf16[48,16], index: 1, kind: input, shape index: {}]   ;;  %s1759_s2 = inlined_call_operand.vmem [shape: bf16[48,16], index: 2, kind: input, shape index: {}]   ;;  %s1760_s3 = inlined_call_operand.vmem [shape: f32[2,128,128], index: 3, kind: input, shape index: {}]   ;;  %s1761_s4 = inlined_call_operand.vmem [shape: f32[2,128,128], index: 4, kind: input, shape index: {}]   ;;  %s1762_s5 = inlined_call_operand.vmem [shape: f32[2,1,128], index: 5, kind: input, shape index: {}]   ;;  %s1763_s6 = inlined_call_operand.vmem [shape: f32[2,128,128], index: 6, kind: input, shape index: {}]   ;;  %s1764_s7 = inlined_call_operand.vmem [shape: f32[2,1,128], index: 7, kind: input, shape index: {}]   ;;  %s1765_s8 = inlined_call_operand.vmem [shape: f32[2,128,128], index: 8, kind: input, shape index: {}]   ;;  %s1766_s9 = inlined_call_operand.vmem [shape: f32[2,128,128], index: 9, kind: input, shape index: {}]   ;;  %s1767_s10 = inlined_call_operand.vmem [shape: f32[2,1,128], index: 10, kind: input, shape index: {}]   ;;  %s1768_s11 = inlined_call_operand.vmem [shape: f32[2,128,128], index: 11, kind: input, shape index: {}]   ;;  %s1769_s12 = inlined_call_operand.vmem [shape: f32[2,1,128], index: 12, kind: input, shape index: {}]   ;;  %s1770_s13 = inlined_call_operand.vmem [shape: f32[16,128], index: 13, kind: output, shape index: {}]  }
   0x1   :  { %1773 = sst [smem:[#allocation11_spill]] %s1760_s3  ;;  %s1506_s27 = smov 0  }
   0x2   :  { %1774 = sst [smem:[#allocation12_spill]] %s1761_s4 }
   0x3   :  { %1775 = sst [smem:[#allocation13_spill]] %s1763_s6 }
   0x4 LB: > { %1776 = sst [smem:[#allocation8_spill]] %s1426_s26  ;;  %s35_s28 = sadd.s32 1, %s1426_s26  ;;  %s1430_s27 = sphi %s1506_s27, %s23_s27   ;;  %s1426_s26 = sphi %s1504_s26, %s1786_s26   ;;  %s1422_s25 = sphi %s1502_s25, %s1785_s25  }
   0x5   : > { %1777 = sst [smem:[#allocation9_spill]] %s1430_s27  ;;  %p1295_p0 = scmp.ge.s32.totalorder %s1430_s27, 1 }
   0x6   : > { %p37_p1 = scmp.ge.s32.totalorder %s35_s28, 2  ;;  %p474_p2 = scmp.lt.s32.totalorder %s1430_s27, 3 }
   0x8   : > { %s1788_s28 = smov (%p37_p1, %s35_s28), 0  ;;  %p475_p3 = pnand %p1295_p0, %p474_p2 }
   0x9   : > { %1778 = sst [smem:[#allocation10_spill]] %s1788_s28  ;;  %p570_p4 = scmp.lt.s32.totalorder (!%p475_p3), %s1422_s25, 1 }
   0xa   : > { %478 = sbr.rel (%p475_p3) target bundleno = 952 (0x3b8), region = 68  ;;  %p613_p5 = scmp.eq.s32.totalorder (!%p475_p3), %s1422_s25, 0 }
   0xb   : > { %s1779_s3 = sld [smem:[#allocation11_spill]] (!%p475_p3) }
   0xc   : > { %s1780_s4 = sld [smem:[#allocation12_spill]] (!%p475_p3) }
   0xd   : > { %s1781_s6 = sld [smem:[#allocation13_spill]] (!%p475_p3) }
   0xf   : > { %s1790_s25 = smov (!%p570_p4, %s1422_s25), 1  ;;  %v629_v0 = vld [vmem:[%s1757_s0] sm:$0xff] (%p613_p5)  ;;  %v631_v1 = vld [vmem:[%s1757_s0 + $0x8] sm:$0xff] (%p613_p5) }
  0x10   : > { %s1351_s29 = sshll.u32 %s1790_s25, 7  ;;  %s603_s22 = scalar_lea.vmem %s1767_s10, %s1790_s25  ;;  %630 = vst [vmem:[%s1770_s13] sm:$0xff] (%p613_p5), %v629_v0 }
  0x11   : > { %s1530_s18 = scalar_lea.vmem %s1779_s3, %s1351_s29  ;;  %s1549_s16 = scalar_lea.vmem %s1765_s8, %s1351_s29  ;;  %632 = vst [vmem:[%s1770_s13 + $0x8] sm:$0xff] (%p613_p5), %v631_v1 }
  0x12   : > { %s1535_s21 = scalar_lea.vmem %s1780_s4, %s1351_s29  ;;  %s1554_s19 = scalar_lea.vmem %s1766_s9, %s1351_s29 }
  0x13   : > { %s1540_s24 = scalar_lea.vmem %s1781_s6, %s1351_s29  ;;  %s1563_s27 = scalar_lea.vmem %s1768_s11, %s1351_s29 }
  0x14   : > { %s611_s15 = scalar_lea.vmem %s1769_s12, %s1790_s25  ;;  %618 = sbr.rel (!%p613_p5) target bundleno = 28 (0x1c), region = 72 }
  0x19   : > { %638 = vsyncadd [#allocation5], 256 }
  0x1a   : > { %1418 = dma.done.wait [#allocation5], 256 }
  0x1b   : > { %1419 = vsyncadd [#allocation5], 4294967040 }
  0x1c PF: > { %v664_v2 = vld [vmem:[%s1530_s18 + $0x78] sm:$0xff]  ;;  %v663_v4 = vld [vmem:[%s1530_s18 + $0x70] sm:$0xff]  ;;  %v662_v6 = vld [vmem:[%s1530_s18 + $0x68] sm:$0xff]  ;;  %vm772_vm0 = vcmask 130048   ;;  %s1783_s3 = scalar_lea.vmem %s1764_s7, %s1790_s25  ;;  %vm955_vm1 = vcmask 392192  }
  0x1d   : > { %v707_v3 = vld [vmem:[%s1535_s21 + $0x78] sm:$0xff]  ;;  %665 = vmatpush.msra.mxu0 %v664_v2  ;;  %v706_v5 = vld [vmem:[%s1535_s21 + $0x70] sm:$0xff]  ;;  %v705_v7 = vld [vmem:[%s1535_s21 + $0x68] sm:$0xff] }
  0x1e   : > { %708 = vmatpush.msra.mxu1 %v707_v3  ;;  %v661_v8 = vld [vmem:[%s1530_s18 + $0x60] sm:$0xff]  ;;  %v660_v10 = vld [vmem:[%s1530_s18 + $0x58] sm:$0xff]  ;;  %v659_v12 = vld [vmem:[%s1530_s18 + $0x50] sm:$0xff] }
  0x1f   : > { %666 = vmatpush.msra.mxu0 %v663_v4  ;;  %v704_v9 = vld [vmem:[%s1535_s21 + $0x60] sm:$0xff]  ;;  %v703_v11 = vld [vmem:[%s1535_s21 + $0x58] sm:$0xff]  ;;  %v702_v13 = vld [vmem:[%s1535_s21 + $0x50] sm:$0xff] }
  0x20   : > { %709 = vmatpush.msra.mxu1 %v706_v5  ;;  %v658_v14 = vld [vmem:[%s1530_s18 + $0x48] sm:$0xff]  ;;  %v657_v16 = vld [vmem:[%s1530_s18 + $0x40] sm:$0xff]  ;;  %v656_v18 = vld [vmem:[%s1530_s18 + $0x38] sm:$0xff] }
  0x21   : > { %667 = vmatpush.msra.mxu0 %v662_v6  ;;  %v701_v15 = vld [vmem:[%s1535_s21 + $0x48] sm:$0xff]  ;;  %v700_v17 = vld [vmem:[%s1535_s21 + $0x40] sm:$0xff]  ;;  %v699_v19 = vld [vmem:[%s1535_s21 + $0x38] sm:$0xff] }
  0x22   : > { %710 = vmatpush.msra.mxu1 %v705_v7  ;;  %v655_v20 = vld [vmem:[%s1530_s18 + $0x30] sm:$0xff]  ;;  %v654_v22 = vld [vmem:[%s1530_s18 + $0x28] sm:$0xff]  ;;  %v653_v24 = vld [vmem:[%s1530_s18 + $0x20] sm:$0xff] }
  0x23   : > { %668 = vmatpush.msra.mxu0 %v661_v8  ;;  %v698_v21 = vld [vmem:[%s1535_s21 + $0x30] sm:$0xff]  ;;  %v697_v23 = vld [vmem:[%s1535_s21 + $0x28] sm:$0xff]  ;;  %v696_v25 = vld [vmem:[%s1535_s21 + $0x20] sm:$0xff] }
  0x24   : > { %711 = vmatpush.msra.mxu1 %v704_v9  ;;  %v652_v26 = vld [vmem:[%s1530_s18 + $0x18] sm:$0xff]  ;;  %v651_v28 = vld [vmem:[%s1530_s18 + $0x10] sm:$0xff]  ;;  %v650_v30 = vld [vmem:[%s1530_s18 + $0x8] sm:$0xff] }
  0x25   : > { %669 = vmatpush.msra.mxu0 %v660_v10  ;;  %v695_v27 = vld [vmem:[%s1535_s21 + $0x18] sm:$0xff]  ;;  %v694_v29 = vld [vmem:[%s1535_s21 + $0x10] sm:$0xff]  ;;  %v693_v31 = vld [vmem:[%s1535_s21 + $0x8] sm:$0xff] }
  0x26   : > { %712 = vmatpush.msra.mxu1 %v703_v11  ;;  %v649_v32 = vld [vmem:[%s1530_s18] sm:$0xff]  ;;  %v1623_v35 = vld [vmem:[%s1770_s13 + $0x8] sm:$0xff]  ;;  %v1363_v46 = vld [vmem:[%s1759_s2 + $0x10] sm:$0xff] }
  0x27   : > { %670 = vmatpush.msra.mxu0 %v659_v12  ;;  %v692_v33 = vld [vmem:[%s1535_s21] sm:$0xff]  ;;  %v1362_v41 = vld [vmem:[%s1759_s2 + $0x8] sm:$0xff]  ;;  %v891_v48 = vld [vmem:[%s1540_s24 + $0x78] sm:$0xff]  ;;  %s1782_s21 = scalar_lea.vmem %s1762_s5, %s1790_s25 }
  0x28   : > { %713 = vmatpush.msra.mxu1 %v702_v13  ;;  %v1616_v34 = vld [vmem:[%s1770_s13] sm:$0xff]  ;;  %v890_v49 = vld [vmem:[%s1540_s24 + $0x70] sm:$0xff]  ;;  %v889_v50 = vld [vmem:[%s1540_s24 + $0x68] sm:$0xff] }
  0x29   : > { %671 = vmatpush.msra.mxu0 %v658_v14  ;;  %v1361_v36 = vld [vmem:[%s1759_s2] sm:$0xff]  ;;  %v1359_v52 = vld [vmem:[%s1758_s1 + $0x8] sm:$0xff]  ;;  %v1360_v53 = vld [vmem:[%s1758_s1 + $0x10] sm:$0xff] }
  0x2a   : > { %714 = vmatpush.msra.mxu1 %v701_v15  ;;  %939 = vxpose.xlu0.c.b16.start [1/3] (short) (narrow) %v1361_v36, 16  ;;  %v1358_v47 = vld [vmem:[%s1758_s1] sm:$0xff]  ;;  %v887_v54 = vld [vmem:[%s1540_s24 + $0x58] sm:$0xff]  ;;  %v886_v55 = vld [vmem:[%s1540_s24 + $0x50] sm:$0xff] }
  0x2b   : > { %672 = vmatpush.msra.mxu0 %v657_v16  ;;  %v888_v51 = vld [vmem:[%s1540_s24 + $0x60] sm:$0xff]  ;;  %v885_v56 = vld [vmem:[%s1540_s24 + $0x48] sm:$0xff]  ;;  %v883_v58 = vld [vmem:[%s1540_s24 + $0x38] sm:$0xff] }
  0x2c   : > { %715 = vmatpush.msra.mxu1 %v700_v17  ;;  %v884_v57 = vld [vmem:[%s1540_s24 + $0x40] sm:$0xff]  ;;  %v882_v59 = vld [vmem:[%s1540_s24 + $0x30] sm:$0xff]  ;;  %v881_v60 = vld [vmem:[%s1540_s24 + $0x28] sm:$0xff] }
  0x2d   : > { %673 = vmatpush.msra.mxu0 %v656_v18  ;;  %v880_v61 = vld [vmem:[%s1540_s24 + $0x20] sm:$0xff]  ;;  %v879_v62 = vld [vmem:[%s1540_s24 + $0x18] sm:$0xff]  ;;  %v878_v63 = vld [vmem:[%s1540_s24 + $0x10] sm:$0xff] }
  0x2e   : > { %716 = vmatpush.msra.mxu1 %v699_v19  ;;  %v877_v0 = vld [vmem:[%s1540_s24 + $0x8] sm:$0xff]  ;;  %v876_v1 = vld [vmem:[%s1540_s24] sm:$0xff] }
  0x2f   : > { %674 = vmatpush.msra.mxu0 %v655_v20  ;;  %v1402_v5 = vld [vmem:[%s1782_s21] ss:$0 sm:$0xff] }
  0x30   : > { %717 = vmatpush.msra.mxu1 %v698_v21 }
  0x31   : > { %675 = vmatpush.msra.mxu0 %v654_v22 }
  0x32   : > { %718 = vmatpush.msra.mxu1 %v697_v23 }
  0x33   : > { %676 = vmatpush.msra.mxu0 %v653_v24 }
  0x34   : > { %719 = vmatpush.msra.mxu1 %v696_v25 }
  0x35   : > { %677 = vmatpush.msra.mxu0 %v652_v26 }
  0x36   : > { %720 = vmatpush.msra.mxu1 %v695_v27 }
  0x37   : > { %678 = vmatpush.msra.mxu0 %v651_v28 }
  0x38   : > { %721 = vmatpush.msra.mxu1 %v694_v29 }
  0x39   : > { %679 = vmatpush.msra.mxu0 %v650_v30 }
  0x3a   : > { %722 = vmatpush.msra.mxu1 %v693_v31  ;;  %940 = vxpose.xlu0.c.b16.cont [2/3] (short) (narrow) %v1362_v41, 16 }
  0x3b   : > { %680 = vmatpush.msra.mxu0 %v649_v32 }
  0x3c   : > { %723 = vmatpush.msra.mxu1 %v692_v33  ;;  %681 = vmatmul.f32.vlgmr.msra.gmra.mxu0 %v1616_v34 }
  0x3d   : > { %724 = vmatmul.f32.vlgmr.msra.gmra.mxu1 %v1616_v34 }
  0x44   : > { %684 = vmatmul.f32.gmra.mxu0 %v1623_v35 }
  0x45   : > { %727 = vmatmul.f32.gmra.mxu1 %v1623_v35 }
  0x4a   : > { %941 = vxpose.xlu0.c.b16.end [3/3] (short) (narrow) %v1363_v46, 16 }
  0xb9   : > { %v682_v37 = vpop.f32.mrf.mxu0 }
  0xba   : > { %v725_v38 = vpop.f32.mrf.mxu1 }
  0xc1   : > { %v685_v39 = vpop.f32.mrf.mxu0 }
  0xc2   : > { %v728_v40 = vpop.f32.mrf.mxu1  ;;  %v1369_v42 = vpack.c.bf16 %v685_v39, %v682_v37  ;;  %v1015_v39 = vld [vmem:[%s1554_s19 + $0x78] sm:$0xff] }
  0xc3   : > { %v1374_v43 = vpack.c.bf16 %v728_v40, %v725_v38  ;;  %v1014_v40 = vld [vmem:[%s1554_s19 + $0x70] sm:$0xff] }
  0xc4   : > { %1370 = vst [vmem:[#allocation3] sm:$0xff] %v1369_v42   ;;  %v997_v42 = vld [vmem:[%s1549_s16 + $0x78] sm:$0xff] }
  0xc5   : > { %1375 = vst [vmem:[#allocation4] sm:$0xff] %v1374_v43   ;;  %v996_v43 = vld [vmem:[%s1549_s16 + $0x70] sm:$0xff]  ;;  %1039 = vmatpush.msrb.mxu1 %v997_v42 }
  0xc7   : > { %1040 = vmatpush.msrb.mxu1 %v996_v43 }
  0xcb   : > { %v1364_v44 = vld [vmem:[#allocation3] sm:$0xff] }
  0xcc   : > { %v1365_v45 = vld [vmem:[#allocation4] sm:$0xff] }
  0xcd   : > { %789 = vmatpush.bf16.msra.mxu2 %v1365_v45  ;;  %1376 = vmatpush.bf16.msra.mxu3 %v1365_v45  ;;  %v995_v45 = vld [vmem:[%s1549_s16 + $0x68] sm:$0xff] }
  0xce   : > { %1041 = vmatpush.msrb.mxu1 %v995_v45 }
  0xd0   : > { %1327 = vmatmul.msk.bf16.vlgmr.msra.gmra.mxu3 %vm772_vm0, %v1363_v46  ;;  %1325 = vmatmul.msk.bf16.vlgmr.msra.gmra.mxu2 %vm772_vm0, %v1361_v36  ;;  %v1011_v46 = vld [vmem:[%s1554_s19 + $0x58] sm:$0xff] }
  0xd1   : > { %843 = vmatpush.bf16.msrb.mxu3 %v1364_v44  ;;  %896 = vmatpush.msrb.mxu2 %v891_v48  ;;  %v1012_v44 = vld [vmem:[%s1554_s19 + $0x60] sm:$0xff] }
  0xd3   : > { %897 = vmatpush.msrb.mxu2 %v890_v49  ;;  %v1010_v49 = vld [vmem:[%s1554_s19 + $0x50] sm:$0xff] }
  0xd5   : > { %898 = vmatpush.msrb.mxu2 %v889_v50  ;;  %1016 = vmatpush.msra.mxu3 %v1015_v39  ;;  %v993_v50 = vld [vmem:[%s1549_s16 + $0x58] sm:$0xff]  ;;  %v1070_v39 = vld [vmem:[%s1563_s27] sm:$0xff] }
  0xd7   : > { %899 = vmatpush.msrb.mxu2 %v888_v51  ;;  %1017 = vmatpush.msra.mxu3 %v1014_v40  ;;  %v1009_v51 = vld [vmem:[%s1554_s19 + $0x48] sm:$0xff] }
  0xd9   : > { %900 = vmatpush.msrb.mxu2 %v887_v54  ;;  %v991_v54 = vld [vmem:[%s1549_s16 + $0x48] sm:$0xff] }
  0xdb   : > { %901 = vmatpush.msrb.mxu2 %v886_v55  ;;  %v1007_v55 = vld [vmem:[%s1554_s19 + $0x38] sm:$0xff] }
  0xdd   : > { %902 = vmatpush.msrb.mxu2 %v885_v56  ;;  %v990_v56 = vld [vmem:[%s1549_s16 + $0x40] sm:$0xff] }
  0xdf   : > { %903 = vmatpush.msrb.mxu2 %v884_v57  ;;  %v1403_v57 = vld [vmem:[%s1783_s3] ss:$0 sm:$0xff] }
  0xe0   : > { %1344 = vmatmul.msk.bf16.vlgmr.msrb.gmra.mxu3 %vm772_vm0, %v1358_v47  ;;  %1326 = vmatmul.msk.bf16.gmra.mxu2 %vm772_vm0, %v1362_v41  ;;  %v1013_v41 = vld [vmem:[%s1554_s19 + $0x68] sm:$0xff]  ;;  %v994_v47 = vld [vmem:[%s1549_s16 + $0x60] sm:$0xff] }
  0xe1   : > { %904 = vmatpush.msrb.mxu2 %v883_v58  ;;  %1018 = vmatpush.msra.mxu3 %v1013_v41  ;;  %v1404_v41 = vld [vmem:[%s603_s22] ss:$0 sm:$0xff] }
  0xe2   : > { %1042 = vmatpush.msrb.mxu1 %v994_v47 }
  0xe3   : > { %905 = vmatpush.msrb.mxu2 %v882_v59  ;;  %1019 = vmatpush.msra.mxu3 %v1012_v44  ;;  %v1006_v59 = vld [vmem:[%s1554_s19 + $0x30] sm:$0xff] }
  0xe4   : > { %1043 = vmatpush.msrb.mxu1 %v993_v50 }
  0xe5   : > { %906 = vmatpush.msrb.mxu2 %v881_v60  ;;  %1020 = vmatpush.msra.mxu3 %v1011_v46  ;;  %v989_v60 = vld [vmem:[%s1549_s16 + $0x38] sm:$0xff] }
  0xe7   : > { %907 = vmatpush.msrb.mxu2 %v880_v61  ;;  %1021 = vmatpush.msra.mxu3 %v1010_v49 }
  0xe9   : > { %908 = vmatpush.msrb.mxu2 %v879_v62  ;;  %1022 = vmatpush.msra.mxu3 %v1009_v51  ;;  %v1405_v51 = vld [vmem:[%s611_s15] ss:$0 sm:$0xff] }
  0xeb   : > { %909 = vmatpush.msrb.mxu2 %v878_v63  ;;  %v1005_v63 = vld [vmem:[%s1554_s19 + $0x28] sm:$0xff] }
  0xed   : > { %910 = vmatpush.msrb.mxu2 %v877_v0 }
  0xef   : > { %911 = vmatpush.msrb.mxu2 %v876_v1 }
  0xf0   : > { %1345 = vmatmul.msk.bf16.gmra.mxu3 %vm772_vm0, %v1359_v52  ;;  %v992_v52 = vld [vmem:[%s1549_s16 + $0x50] sm:$0xff] }
  0xf1   : > { %1044 = vmatpush.msrb.mxu1 %v992_v52 }
  0xf3   : > { %1045 = vmatpush.msrb.mxu1 %v991_v54 }
  0xf5   : > { %1046 = vmatpush.msrb.mxu1 %v990_v56 }
  0xf7   : > { %1047 = vmatpush.msrb.mxu1 %v989_v60 }
 0x100   : > { %1346 = vmatmul.msk.bf16.gmra.mxu3 %vm772_vm0, %v1360_v53  ;;  %v1008_v53 = vld [vmem:[%s1554_s19 + $0x40] sm:$0xff] }
 0x101   : > { %1023 = vmatpush.msra.mxu3 %v1008_v53 }
 0x103   : > { %1024 = vmatpush.msra.mxu3 %v1007_v55 }
 0x105   : > { %1025 = vmatpush.msra.mxu3 %v1006_v59 }
 0x107   : > { %1026 = vmatpush.msra.mxu3 %v1005_v63 }
 0x153   : > { %v801_v2 = vpop.f32.mrf.mxu3  ;;  %v791_v4 = vpop.f32.mrf.mxu2 }
 0x15b   : > { %v803_v3 = vpop.f32.mrf.mxu3  ;;  %v793_v9 = vpop.f32.mrf.mxu2 }
 0x163   : > { %v845_v6 = vpop.f32.mrf.mxu3  ;;  %v796_v15 = vpop.f32.mrf.mxu2 }
 0x164   : > { %v846_v7 = vadd.f32 %v845_v6, %v791_v4  ;;  %v1003_v6 = vld [vmem:[%s1554_s19 + $0x18] sm:$0xff] }
 0x166   : > { %v864_v8 = vadd.f32 %v1402_v5, %v846_v7 }
 0x168   : > { %v870_v10 = vmax.f32 %v864_v8, 0.0 }
 0x16a   : > { %912 = vmatmul.f32.vlgmr.msrb.gmra.mxu2 %v870_v10  ;;  %v1002_v10 = vld [vmem:[%s1554_s19 + $0x10] sm:$0xff] }
 0x16b   : > { %v847_v11 = vpop.f32.mrf.mxu3  ;;  %v798_v20 = vpop.f32.mrf.mxu2 }
 0x16c   : > { %v848_v12 = vadd.f32 %v847_v11, %v793_v9  ;;  %v986_v9 = vld [vmem:[%s1549_s16 + $0x20] sm:$0xff] }
 0x16e   : > { %v865_v13 = vadd.f32 %v1402_v5, %v848_v12  ;;  %v1001_v12 = vld [vmem:[%s1554_s19 + $0x8] sm:$0xff] }
 0x170   : > { %v871_v14 = vmax.f32 %v865_v13, 0.0 }
 0x172   : > { %915 = vmatmul.f32.gmra.mxu2 %v871_v14  ;;  %v947_v14 = vpop.trf.xlu0 }
 0x173   : > { %v850_v16 = vpop.f32.mrf.mxu3 }
 0x174   : > { %v851_v17 = vadd.f32 %v850_v16, %v796_v15  ;;  %v1000_v15 = vld [vmem:[%s1554_s19] sm:$0xff]  ;;  %v985_v16 = vld [vmem:[%s1549_s16 + $0x18] sm:$0xff] }
 0x176   : > { %v866_v18 = vadd.f32 %v1402_v5, %v851_v17  ;;  %v984_v17 = vld [vmem:[%s1549_s16 + $0x10] sm:$0xff] }
 0x178   : > { %v872_v19 = vmax.f32 %v866_v18, 0.0  ;;  %v983_v18 = vld [vmem:[%s1549_s16 + $0x8] sm:$0xff] }
 0x17a   : > { %918 = vmatmul.f32.gmra.mxu2 %v872_v19  ;;  %v982_v19 = vld [vmem:[%s1549_s16] sm:$0xff] }
 0x17b   : > { %v852_v21 = vpop.f32.mrf.mxu3 }
 0x17c   : > { %v853_v22 = vadd.f32 %v852_v21, %v798_v20  ;;  %v1085_v20 = vld [vmem:[%s1563_s27 + $0x78] sm:$0xff]  ;;  %v1084_v21 = vld [vmem:[%s1563_s27 + $0x70] sm:$0xff] }
 0x17e   : > { %v867_v23 = vadd.f32 %v1402_v5, %v853_v22  ;;  %v1083_v22 = vld [vmem:[%s1563_s27 + $0x68] sm:$0xff] }
 0x180   : > { %v873_v24 = vmax.f32 %v867_v23, 0.0  ;;  %v1082_v23 = vld [vmem:[%s1563_s27 + $0x60] sm:$0xff] }
 0x182   : > { %921 = vmatmul.f32.gmra.mxu2 %v873_v24  ;;  %v1081_v24 = vld [vmem:[%s1563_s27 + $0x58] sm:$0xff] }
 0x183   : > { %v855_v25 = vpop.f32.mrf.mxu3 }
 0x184   : > { %v856_v26 = vadd.f32 %v855_v25, %v801_v2  ;;  %v988_v2 = vld [vmem:[%s1549_s16 + $0x30] sm:$0xff] }
 0x185   : > { %1048 = vmatpush.msrb.mxu1 %v988_v2  ;;  %v1080_v25 = vld [vmem:[%s1563_s27 + $0x50] sm:$0xff] }
 0x186   : > { %v868_v27 = vadd.f32 %v1402_v5, %v856_v26  ;;  %v1079_v26 = vld [vmem:[%s1563_s27 + $0x48] sm:$0xff] }
 0x188   : > { %v874_v28 = vmax.f32 %v868_v27, 0.0  ;;  %v1078_v27 = vld [vmem:[%s1563_s27 + $0x40] sm:$0xff] }
 0x18a   : > { %924 = vmatmul.f32.gmra.mxu2 %v874_v28  ;;  %v1077_v28 = vld [vmem:[%s1563_s27 + $0x38] sm:$0xff] }
 0x18b   : > { %v857_v29 = vpop.f32.mrf.mxu3 }
 0x18c   : > { %v858_v30 = vadd.f32 %v857_v29, %v803_v3  ;;  %v1004_v3 = vld [vmem:[%s1554_s19 + $0x20] sm:$0xff]  ;;  %v1076_v29 = vld [vmem:[%s1563_s27 + $0x30] sm:$0xff] }
 0x18d   : > { %1027 = vmatpush.msra.mxu3 %v1004_v3 }
 0x18e   : > { %v869_v31 = vadd.f32 %v1402_v5, %v858_v30  ;;  %v987_v5 = vld [vmem:[%s1549_s16 + $0x28] sm:$0xff] }
 0x18f   : > { %1049 = vmatpush.msrb.mxu1 %v987_v5  ;;  %1028 = vmatpush.msra.mxu3 %v1003_v6  ;;  %v1075_v30 = vld [vmem:[%s1563_s27 + $0x28] sm:$0xff] }
 0x190   : > { %v875_v32 = vmax.f32 %v869_v31, 0.0  ;;  %v1074_v31 = vld [vmem:[%s1563_s27 + $0x20] sm:$0xff] }
 0x191   : > { %1050 = vmatpush.msrb.mxu1 %v986_v9  ;;  %1029 = vmatpush.msra.mxu3 %v1002_v10 }
 0x192   : > { %927 = vmatmul.f32.gmra.mxu2 %v875_v32 }
 0x193   : > { %1030 = vmatpush.msra.mxu3 %v1001_v12  ;;  %1051 = vmatpush.msrb.mxu1 %v985_v16 }
 0x195   : > { %1031 = vmatpush.msra.mxu3 %v1000_v15  ;;  %1052 = vmatpush.msrb.mxu1 %v984_v17 }
 0x197   : > { %1053 = vmatpush.msrb.mxu1 %v983_v18 }
 0x199   : > { %1054 = vmatpush.msrb.mxu1 %v982_v19 }
 0x19a   : > { %1055 = vmatmul.f32.vlgmr.msrb.gmra.mxu1 %v1616_v34 }
 0x1a2   : > { %1058 = vmatmul.f32.gmra.mxu1 %v1623_v35 }
 0x1ed   : > { %v1672_v33 = vpop.f32.mrf.mxu2 }
 0x1ee   : > { %v914_v11 = vadd.f32 %v1403_v57, %v1672_v33 }
 0x1f5   : > { %v916_v36 = vpop.f32.mrf.mxu2 }
 0x1f6   : > { %v917_v7 = vadd.f32 %v1403_v57, %v916_v36  ;;  %v1073_v36 = vld [vmem:[%s1563_s27 + $0x18] sm:$0xff] }
 0x1f8   : > { %v933_v13 = vpack.c.bf16 %v917_v7, %v914_v11 }
 0x1fd   : > { %v919_v37 = vpop.f32.mrf.mxu2 }
 0x1fe   : > { %v920_v4 = vadd.f32 %v1403_v57, %v919_v37  ;;  %v1072_v37 = vld [vmem:[%s1563_s27 + $0x10] sm:$0xff] }
 0x205   : > { %v922_v38 = vpop.f32.mrf.mxu2 }
 0x206   : > { %v923_v0 = vadd.f32 %v1403_v57, %v922_v38  ;;  %v1071_v38 = vld [vmem:[%s1563_s27 + $0x8] sm:$0xff] }
 0x208   : > { %v934_v8 = vpack.c.bf16 %v923_v0, %v920_v4 }
 0x20d   : > { %v925_v48 = vpop.f32.mrf.mxu2 }
 0x20e   : > { %v926_v61 = vadd.f32 %v1403_v57, %v925_v48 }
 0x215   : > { %v928_v58 = vpop.f32.mrf.mxu2 }
 0x216   : > { %v929_v62 = vadd.f32 %v1403_v57, %v928_v58 }
 0x217   : > { %v1056_v40 = vpop.f32.mrf.mxu1 }
 0x218   : > { %v935_v1 = vpack.c.bf16 %v929_v62, %v926_v61 }
 0x21a   : > { %964 = vmatpush.bf16.msrb.mxu0 %v935_v1 }
 0x21e   : > { %965 = vmatpush.bf16.msrb.mxu0 %v934_v8 }
 0x21f   : > { %v1059_v46 = vpop.f32.mrf.mxu1 }
 0x222   : > { %966 = vmatpush.bf16.msrb.mxu0 %v933_v13 }
 0x225   : > { %1347 = vmatmul.msk.bf16.vlgmr.msrb.gmra.mxu0 %vm955_vm1, %v947_v14 }
 0x226   : > { %1090 = vmatpush.msra.mxu0 %v1085_v20 }
 0x228   : > { %1091 = vmatpush.msra.mxu0 %v1084_v21 }
 0x22a   : > { %1092 = vmatpush.msra.mxu0 %v1083_v22 }
 0x22c   : > { %1093 = vmatpush.msra.mxu0 %v1082_v23 }
 0x22e   : > { %1094 = vmatpush.msra.mxu0 %v1081_v24 }
 0x230   : > { %1095 = vmatpush.msra.mxu0 %v1080_v25 }
 0x232   : > { %1096 = vmatpush.msra.mxu0 %v1079_v26 }
 0x234   : > { %1097 = vmatpush.msra.mxu0 %v1078_v27 }
 0x236   : > { %1098 = vmatpush.msra.mxu0 %v1077_v28 }
 0x238   : > { %1099 = vmatpush.msra.mxu0 %v1076_v29 }
 0x23a   : > { %1100 = vmatpush.msra.mxu0 %v1075_v30 }
 0x23c   : > { %1101 = vmatpush.msra.mxu0 %v1074_v31 }
 0x23e   : > { %1102 = vmatpush.msra.mxu0 %v1073_v36 }
 0x240   : > { %1103 = vmatpush.msra.mxu0 %v1072_v37 }
 0x242   : > { %1104 = vmatpush.msra.mxu0 %v1071_v38 }
 0x244   : > { %1105 = vmatpush.msra.mxu0 %v1070_v39 }
 0x2a2   : > { %v968_v32 = vpop.f32.mrf.mxu0 }
 0x2a3   : > { %1032 = vmatmul.f32.vlgmr.msra.gmra.mxu3 %v968_v32 }
 0x2aa   : > { %v970_v33 = vpop.f32.mrf.mxu0 }
 0x2ab   : > { %1035 = vmatmul.f32.gmra.mxu3 %v970_v33 }
 0x326   : > { %v1033_v42 = vpop.f32.mrf.mxu3 }
 0x327   : > { %v1057_v43 = vadd.f32 %v1056_v40, %v1033_v42 }
 0x329   : > { %v1066_v44 = vadd.f32 %v1404_v41, %v1057_v43 }
 0x32b   : > { %v1068_v45 = vmax.f32 %v1066_v44, 0.0 }
 0x32d   : > { %1106 = vmatmul.f32.vlgmr.msra.gmra.mxu0 %v1068_v45 }
 0x32e   : > { %v1036_v47 = vpop.f32.mrf.mxu3 }
 0x32f   : > { %v1060_v48 = vadd.f32 %v1059_v46, %v1036_v47 }
 0x331   : > { %v1067_v49 = vadd.f32 %v1404_v41, %v1060_v48 }
 0x333   : > { %v1069_v50 = vmax.f32 %v1067_v49, 0.0 }
 0x335   : > { %1109 = vmatmul.f32.gmra.mxu0 %v1069_v50 }
 0x3aa   : > { %v1107_v52 = vpop.f32.mrf.mxu0 }
 0x3ab   : > { %v1108_v53 = vadd.f32 %v1405_v51, %v1107_v52 }
 0x3ad   : > { %v1113_v54 = vadd.f32 %v1108_v53, %v1616_v34 }
 0x3af   : > { %1115 = vst [vmem:[%s1770_s13] sm:$0xff] %v1113_v54 }
 0x3b2   : > { %v1110_v55 = vpop.f32.mrf.mxu0 }
 0x3b3   : > { %v1111_v56 = vadd.f32 %v1405_v51, %v1110_v55 }
 0x3b5   : > { %v1114_v57 = vadd.f32 %v1111_v56, %v1623_v35 }
 0x3b7   : > { %1116 = vst [vmem:[%s1770_s13 + $0x8] sm:$0xff] %v1114_v57 }
 0x3b8 PF: > { %s1784_s29 = sld [smem:[#allocation9_spill]] }
 0x3b9   : > { %s1785_s25 = sld [smem:[#allocation8_spill]] }
 0x3ba   : > { %s1786_s26 = sld [smem:[#allocation10_spill]] }
 0x3be   : > { %s23_s27 = sadd.s32 1, %s1784_s29  }
 0x3bf   : > { %p20_p6 = scmp.ge.s32.totalorder %s23_s27, 4  }
 0x3c1   :  { %22 = sbr.rel (!%p20_p6) target bundleno = 4 (0x4), region = 162 }
 0x3c6   :  { %1128 = vsyncmov [#allocation5] }
 0x3c9   :  { %s1129_s15 = vpop.sfrf %1128 }
 0x3ca   :  { %p1350_p7 = scmp.ne.s32.totalorder %s1129_s15, 0 }
 0x3cc   :  { %1133 = shalt.err (%p1350_p7)  }

</bundles_post_ra>
